<compile_context>
chip_gen: v7x
topology: tpu7x:2x2x1
jax: 0.10.0
libtpu: 0.0.40
codegen_flags: <defaults>
</compile_context>

<pallas_src>
import jax
import jax.numpy as jnp
from jax.experimental import pallas as pl
from jax.experimental.pallas import tpu as pltpu


def _round_up(n, m):
    return ((n + m - 1) // m) * m


def _choose_tiles(b, k):
    # x tile = TB*TK*4 bytes; 512 x 2048 f32 = 4 MiB -> 8 MiB double-buffered,
    # comfortably inside the 32 MiB scoped VMEM default on v5e/v6e/v7x.
    tb = min(512, _round_up(b, 8))       # sublane multiple for f32
    tk = min(2048, _round_up(k, 128))    # lane multiple
    return tb, tk


def _matvec_bias_kernel(x_ref, w_ref, b_ref, o_ref, acc_ref):
    """(TB, TK) x-tile times lane-dense (1, TK) weight slice, reduced over K."""
    k = pl.program_id(1)

    @pl.when(k == 0)
    def _():
        acc_ref[...] = jnp.zeros_like(acc_ref)

    # VPU multiply + XLU lane reduction; accumulate in f32.
    acc_ref[...] += jnp.sum(
        x_ref[...].astype(jnp.float32) * w_ref[...].astype(jnp.float32),
        axis=-1, keepdims=True)

    @pl.when(k == pl.num_programs(1) - 1)
    def _():
        o_ref[...] = (acc_ref[...] + b_ref[0]).astype(o_ref.dtype)


def base_model_forward(x, weight, bias):
    """x: (B, F, D); weight: (1, F*D) (PyTorch Linear layout); bias: (1,)."""
    B = x.shape[0]
    K = x.shape[1] * x.shape[2]

    x_flat = x.reshape(B, K)                       # view(nbatches, -1)
    w = weight.reshape(1, K)                       # lane-dense, no transpose
    b = bias.reshape(1).astype(jnp.float32)        # SMEM scalar

    TB, TK = _choose_tiles(B, K)
    B_pad = _round_up(B, TB)
    K_pad = _round_up(K, TK)
    if B_pad != B or K_pad != K:
        x_flat = jnp.pad(x_flat, ((0, B_pad - B), (0, K_pad - K)))
    if K_pad != K:
        w = jnp.pad(w, ((0, 0), (0, K_pad - K)))

    grid = (B_pad // TB, K_pad // TK)

    cost = pl.CostEstimate(
        flops=2 * B * K,
        transcendentals=0,
        bytes_accessed=4 * (B * K + K + B + 1))

    out = pl.pallas_call(
        _matvec_bias_kernel,
        out_shape=jax.ShapeDtypeStruct((B_pad, 1), x.dtype),
        grid_spec=pl.GridSpec(
            grid=grid,
            in_specs=[
                pl.BlockSpec((TB, TK), lambda i, k: (i, k)),   # x tile (streamed)
                pl.BlockSpec((1, TK), lambda i, k: (0, k)),    # weight slice
                pl.BlockSpec(memory_space=pltpu.MemorySpace.SMEM),  # bias scalar
            ],
            out_specs=pl.BlockSpec((TB, 1), lambda i, k: (i, 0)),
            scratch_shapes=[pltpu.VMEM((TB, 1), jnp.float32)],
        ),
        compiler_params=pltpu.CompilerParams(
            # batch axis parallel (v7x megacore), K is the reduction axis.
            dimension_semantics=("parallel", "arbitrary"),
        ),
        cost_estimate=cost,
    )(x_flat, w, b)

    return out[:B]


if __name__ == "__main__":
    # Small shapes consistent with the module: Batch x Feature x d_model -> Batch x 1
    B, features, d_model = 2, 4, 32
    K = features * d_model

    key = jax.random.PRNGKey(0)
    kx, kw, kb = jax.random.split(key, 3)

    x = jax.random.normal(kx, (B, features, d_model), dtype=jnp.float32)

    # Deterministic parameter init mimicking nn.Linear(K, 1) uniform(-1/sqrt(K), 1/sqrt(K))
    bound = 1.0 / jnp.sqrt(jnp.float32(K))
    weight = jax.random.uniform(kw, (1, K), minval=-bound, maxval=bound, dtype=jnp.float32)
    bias = jax.random.uniform(kb, (1,), minval=-bound, maxval=bound, dtype=jnp.float32)

    y = base_model_forward(x, weight, bias)
    y = jax.block_until_ready(y)

    # Reference check in plain JAX (same math as the PyTorch forward)
    y_ref = x.reshape(B, -1) @ weight.T + bias
    assert y.shape == (B, 1)
    assert jnp.allclose(y, y_ref, atol=1e-5), (y, y_ref)

    print("KERNEL_OK")
</pallas_src>

<mosaic_0001>
module attributes {stable_mosaic.version = 11 : i64} {
  func.func @_matvec_bias_kernel(%arg0: i32, %arg1: i32, %arg2: memref<8x128xf32, #tpu.memory_space<vmem>>, %arg3: memref<1x128xf32, #tpu.memory_space<vmem>>, %arg4: memref<1xf32, #tpu.memory_space<smem>>, %arg5: memref<8x1xf32, #tpu.memory_space<vmem>>, %arg6: memref<8x1xf32, #tpu.memory_space<vmem>>) attributes {dimension_semantics = [#tpu.dimension_semantics<parallel>, #tpu.dimension_semantics<arbitrary>], iteration_bounds = array<i64: 1, 1>, scalar_prefetch = 0 : i64, scratch_operands = 1 : i64, tpu.core_type = #tpu.core_type<tc>, window_params = [{transform_indices = @transform_0, window_bounds = array<i64: 8, 128>}, {transform_indices = @transform_1, window_bounds = array<i64: 1, 128>}, {transform_indices = @transform_2, window_bounds = array<i64: 1>}, {transform_indices = @transform_3, window_bounds = array<i64: 8, 1>}]} {
    %c0_i32 = arith.constant 0 : i32
    %0 = arith.cmpi eq, %arg1, %c0_i32 : i32
    %1 = arith.extui %0 : i1 to i32
    %c0_i32_0 = arith.constant 0 : i32
    %2 = arith.cmpi ne, %1, %c0_i32_0 : i32
    scf.if %2 {
      %cst_10 = arith.constant 0.000000e+00 : f32
      %15 = vector.broadcast %cst_10 : f32 to vector<8x1xf32>
      %c0_11 = arith.constant 0 : index
      %c0_12 = arith.constant 0 : index
      %16 = vector.load %arg6[%c0_11, %c0_12] : memref<8x1xf32, #tpu.memory_space<vmem>>, vector<8x1xf32>
      tpu.vector_store %arg6[%c0_11, %c0_12], %15 {strides = array<i32>} : memref<8x1xf32, #tpu.memory_space<vmem>>, vector<8x1xf32>,
    } else {
    }
    %c0 = arith.constant 0 : index
    %c0_1 = arith.constant 0 : index
    %3 = vector.load %arg6[%c0, %c0_1] : memref<8x1xf32, #tpu.memory_space<vmem>>, vector<8x1xf32>
    %c0_2 = arith.constant 0 : index
    %c0_3 = arith.constant 0 : index
    %4 = vector.load %arg2[%c0_2, %c0_3] : memref<8x128xf32, #tpu.memory_space<vmem>>, vector<8x128xf32>
    %c0_4 = arith.constant 0 : index
    %c0_5 = arith.constant 0 : index
    %5 = vector.load %arg3[%c0_4, %c0_5] : memref<1x128xf32, #tpu.memory_space<vmem>>, vector<1x128xf32>
    %6 = vector.broadcast %5 : vector<1x128xf32> to vector<8x128xf32>
    %7 = arith.mulf %4, %6 : vector<8x128xf32>
    %cst = arith.constant dense<0.000000e+00> : vector<8xf32>
    %8 = vector.multi_reduction <add>, %7, %cst [1] : vector<8x128xf32> to vector<8xf32>
    %9 = vector.shape_cast %8 : vector<8xf32> to vector<8x1xf32>
    %10 = arith.addf %3, %9 : vector<8x1xf32>
    %c0_6 = arith.constant 0 : index
    %c0_7 = arith.constant 0 : index
    %11 = vector.load %arg6[%c0_6, %c0_7] : memref<8x1xf32, #tpu.memory_space<vmem>>, vector<8x1xf32>
    tpu.vector_store %arg6[%c0_6, %c0_7], %10 {strides = array<i32>} : memref<8x1xf32, #tpu.memory_space<vmem>>, vector<8x1xf32>,
    %c0_i32_8 = arith.constant 0 : i32
    %12 = arith.cmpi eq, %arg1, %c0_i32_8 : i32
    %13 = arith.extui %12 : i1 to i32
    %c0_i32_9 = arith.constant 0 : i32
    %14 = arith.cmpi ne, %13, %c0_i32_9 : i32
    scf.if %14 {
      %c0_10 = arith.constant 0 : index
      %c0_11 = arith.constant 0 : index
      %15 = vector.load %arg6[%c0_10, %c0_11] : memref<8x1xf32, #tpu.memory_space<vmem>>, vector<8x1xf32>
      %c0_12 = arith.constant 0 : index
      %16 = memref.load %arg4[%c0_12] : memref<1xf32, #tpu.memory_space<smem>>
      %17 = vector.broadcast %16 : f32 to vector<8x1xf32>
      %18 = arith.addf %15, %17 : vector<8x1xf32>
      %c0_13 = arith.constant 0 : index
      %c0_14 = arith.constant 0 : index
      %19 = vector.load %arg5[%c0_13, %c0_14] : memref<8x1xf32, #tpu.memory_space<vmem>>, vector<8x1xf32>
      tpu.vector_store %arg5[%c0_13, %c0_14], %18 {strides = array<i32>} : memref<8x1xf32, #tpu.memory_space<vmem>>, vector<8x1xf32>,
    } else {
    }
    return
  }
  func.func @transform_0(%arg0: i32, %arg1: i32) -> (i32, i32) {
    %c0_i32 = arith.constant 0 : i32
    return %arg0, %arg1 : i32, i32
  }
  func.func @transform_1(%arg0: i32, %arg1: i32) -> (i32, i32) {
    %c0_i32 = arith.constant 0 : i32
    %c0_i32_0 = arith.constant 0 : i32
    return %c0_i32, %arg1 : i32, i32
  }
  func.func @transform_2(%arg0: i32, %arg1: i32) -> i32 {
    %c0_i32 = arith.constant 0 : i32
    %c0_i32_0 = arith.constant 0 : i32
    return %c0_i32 : i32
  }
  func.func @transform_3(%arg0: i32, %arg1: i32) -> (i32, i32) {
    %c0_i32 = arith.constant 0 : i32
    %c0_i32_0 = arith.constant 0 : i32
    return %arg0, %c0_i32 : i32, i32
  }
}

</mosaic_0001>

<bundles_post_ra>
// kernel: tpu_custom_call.1
= control target key start
LH: loop header
LB: loop body
LE: loop exit
PB: predicated region body
PF: predicated region fallthrough
CT: control target
= control target key end

     0   :  { %9 = vsyncpa [#allocation5], 0  ;;  %s88_s12 = smov [#allocation4]   ;;  %s131_s0 = inlined_call_operand.hbm [shape: f32[8,128], index: 0, kind: input, shape index: {}]   ;;  %s132_s1 = inlined_call_operand.vmem [shape: f32[1,128], index: 1, kind: input, shape index: {}]   ;;  %s133_s2 = inlined_call_operand.<no memory space> [shape: f32[1], index: 2, kind: input, shape index: {}]   ;;  %s134_s3 = inlined_call_operand.vmem [shape: f32[8,1], index: 3, kind: output, shape index: {}]  }
   0x1   :  { %s16_s13 = sshll.u32 %s88_s12, 4  ;;  %s64_s16 = scalar_lea.hbm %s131_s0, 128  ;;  %s17_s13 = int_to_ptr.vmem [resolvable:$true] %s16_s13 }
   0x2   :  { %p65_p0 = scmp.ne.s32.totalorder %s131_s0, %s64_s16  ;;  %p68_p1 = scmp.lt.u32.totalorder %s64_s16, %s131_s0 }
   0x4   :  { %p70_p2 = pnand %p68_p1, %p65_p0 }
   0x6   :  { %73 = shalt.err (!%p70_p2)
}
   0x7   :  { %s74_s21 = scalar_lea.vmem %s17_s13, 128  ;;  %p79_p4 = scmp.lt.s32.totalorder %s17_s13, %s17_s13 }
   0x8   :  { %p75_p3 = scmp.ne.s32.totalorder %s17_s13, %s74_s21  ;;  %p80_p5 = scmp.lt.s32.totalorder %s74_s21, %s74_s21 }
   0xa   :  { %p81_p6 = por %p80_p5, %p79_p4 }
   0xc   :  { %p82_p7 = pnand %p81_p6, %p75_p3 }
   0xe   :  { %85 = shalt.err (!%p82_p7)
}
   0xf   :  { %19 = dma.hbm_to_vmem [thread:$0]  %s131_s0, 128, %s17_s13, [#allocation5]  }
  0x10   :  { %86 = dma.done.wait [#allocation5], 128  }
  0x11   :  { %87 = vsyncadd [#allocation5], 4294967168  ;;  %vm31_vm0 = vcmask 7168   ;;  %v89_v0 = vmov 0.0   ;;  %v34_v1 = vld [vmem:[#allocation4] sm:$0xff]  ;;  %v53_v7 = vstv %s133_s2 }
  0x12   :  { %32 = vst.msk [vmem:[#allocation2] sm:$0xff] %vm31_vm0, %v89_v0  ;;  %v61_v2 = vld [vmem:[%s132_s1] ss:$0 sm:$0xff] }
  0x13   :  { %v42_v3 = vmul.f32 %v61_v2, %v34_v1 }
  0x15   :  { %43 = vadd.xlane.f32.xlu0 %v42_v3 }
  0x19   :  { %v33_v4 = vld [vmem:[#allocation2] sm:$0xff] }
  0xa2   :  { %v44_v5 = vpop.xlane.xlu0 %43 }
  0xa3   :  { %v45_v6 = vadd.f32 %v44_v5, %v33_v4 }
  0xa5   :  { %47 = vst.msk [vmem:[#allocation2] sm:$0xff] %vm31_vm0, %v45_v6 }
  0xac   :  { %v51_v8 = vld [vmem:[#allocation2] sm:$0xff] }
  0xad   :  { %v54_v9 = vadd.f32 %v53_v7, %v51_v8 }
  0xaf   :  { %55 = vst.msk [vmem:[%s134_s3] sm:$0xff] %vm31_vm0, %v54_v9 }
  0xb0   :  { %60 = vsyncpa [#allocation5], 1 }

</bundles_post_ra>
